<compile_context>
chip_gen: v7x
topology: tpu7x:2x2x1
jax: 0.10.0
libtpu: 0.0.40
codegen_flags: <defaults>
</compile_context>

<pallas_src>
import jax
import jax.numpy as jnp
from jax.experimental import pallas as pl
from jax.experimental.pallas import tpu as pltpu


_SPLIT_MIN_ROWS = 1024      # split medium batches into >=2 tiles (v7x megacore)
_TB_CAP_BIG_VMEM = 16384    # v5e / v6e: 128 MiB physical VMEM
_TB_CAP_SMALL_VMEM = 8192   # v7x (or unknown): 64 MiB per-TC VMEM


def _cdiv(a, b):
    return -(-a // b)


def _round_up(n, m):
    return _cdiv(n, m) * m


def _lane_pad(n):
    return _round_up(max(int(n), 1), 128)


def _tpu_vmem_capacity():
    """Physical VMEM bytes (conservative 64 MiB fallback if query fails)."""
    try:
        info = pltpu.get_tpu_info()
        cap = int(getattr(info, "vmem_capacity_bytes", 0) or 0)
        if cap > 0:
            return cap
    except Exception:
        pass
    return 64 * 1024 * 1024


def _pick_tiling(batch, obs_dim, act_dim, hidden_max, act_itemsize):
    """Pick (batch tile, vmem_limit_bytes) from lane-padded VMEM budgeting."""
    vmem_cap = _tpu_vmem_capacity()
    big_vmem = vmem_cap >= 100 * 1024 * 1024
    vmem_limit = (96 if big_vmem else 48) * 1024 * 1024
    gen_cap = _TB_CAP_BIG_VMEM if big_vmem else _TB_CAP_SMALL_VMEM

    # Per-row VMEM from lane-padded widths: double-buffered obs/act inputs,
    # double-buffered (tb, 1) output column, plus ~4 live f32 intermediates.
    in_cols = _lane_pad(obs_dim) + (_lane_pad(act_dim) if act_dim else 0)
    per_row = (2 * in_cols * act_itemsize        # input double-buffers
               + 2 * 128 * 4                     # output column double-buffers
               + 4 * _lane_pad(hidden_max) * 4)  # live f32 intermediates
    budget = vmem_limit - 8 * 1024 * 1024        # weights + compiler scratch headroom
    tb_max = min(gen_cap, max(8, (budget // per_row) // 8 * 8))

    if batch < 8:
        tb = batch                               # full-extent block, no partials
    else:
        if batch > tb_max:
            num_tiles = _cdiv(batch, tb_max)
        elif batch >= _SPLIT_MIN_ROWS:
            num_tiles = 2                        # >=2 steps -> both TCs on v7x
        else:
            num_tiles = 1
        tb = min(_round_up(_cdiv(batch, num_tiles), 8), _round_up(batch, 8))
    return tb, vmem_limit


def _mlp_tail(pre1, b1_ref, w2_ref, b2_ref, wl_ref, bl_ref, out_ref):
    # pre1: (tb, H1) f32 pre-activation of layer 1 (bias not yet added).
    h = jnp.maximum(pre1 + b1_ref[...], 0.0)
    h = jnp.dot(h.astype(w2_ref.dtype), w2_ref[...],
                preferred_element_type=jnp.float32) + b2_ref[...]
    h = jnp.maximum(h, 0.0)
    # Final Linear(H2, 1): VPU multiply + cross-lane reduce (wl stored as (1, H2) row).
    v = jnp.sum(h * wl_ref[...], axis=-1, keepdims=True) + bl_ref[...]
    out_ref[...] = v.astype(out_ref.dtype)


def _critic_kernel_obs_act(obs_ref, act_ref, w1o_ref, w1a_ref, b1_ref,
                           w2_ref, b2_ref, wl_ref, bl_ref, out_ref):
    pre1 = jnp.dot(obs_ref[...], w1o_ref[...], preferred_element_type=jnp.float32)
    pre1 = pre1 + jnp.dot(act_ref[...], w1a_ref[...],
                          preferred_element_type=jnp.float32)
    _mlp_tail(pre1, b1_ref, w2_ref, b2_ref, wl_ref, bl_ref, out_ref)


def _critic_kernel_obs_only(obs_ref, w1_ref, b1_ref, w2_ref, b2_ref,
                            wl_ref, bl_ref, out_ref):
    pre1 = jnp.dot(obs_ref[...], w1_ref[...], preferred_element_type=jnp.float32)
    _mlp_tail(pre1, b1_ref, w2_ref, b2_ref, wl_ref, bl_ref, out_ref)


def critic_forward(obs, actions, params, *, use_bf16=False):
    """Fused Critic forward.

    obs:     (B, obs_dim)
    actions: (B, ...) or None (flattened over non-batch dims, concatenated to obs)
    params:  dict with w1 (D, H1), b1 (1, H1), w2 (H1, H2), b2 (1, H2),
             w_last (1, H2) row, b_last (1, 1); D = obs_dim (+ act_dim).
             Passing a different dict == the PyTorch `weightM` override path.
    use_bf16: stream activations / w1 / w2 as bf16 (f32 accumulate & epilogue);
             halves the dominant HBM read traffic at slightly looser numerics.
    returns: (B, 1) float32
    """
    obs = jnp.asarray(obs, jnp.float32)
    B, obs_dim = obs.shape
    H1 = params["w1"].shape[1]
    H2 = params["w2"].shape[1]

    if actions is not None:
        actions = jnp.asarray(actions, jnp.float32).reshape(B, -1)  # flatten(1)
        act_dim = actions.shape[1]
    else:
        act_dim = 0

    act_dtype = jnp.bfloat16 if use_bf16 else jnp.float32
    obs = obs.astype(act_dtype)
    if actions is not None:
        actions = actions.astype(act_dtype)

    tb, vmem_limit = _pick_tiling(B, obs_dim, act_dim, max(H1, H2),
                                  jnp.dtype(act_dtype).itemsize)
    grid_steps = _cdiv(B, tb)          # final block may be partial -> no jnp.pad copy
    grid = (grid_steps,)

    # 3-deep buffering only pays off with moderate tiles and a long enough grid.
    buffering = {}
    if tb <= 4096 and grid_steps >= 3:
        buffering = dict(pipeline_mode=pl.Buffered(3))

    def row_spec(ncols):               # batch-tiled activation streams
        return pl.BlockSpec((tb, ncols), lambda i: (i, 0), **buffering)

    def resident_spec(shape):          # weights/biases: DMA once, stay in VMEM
        return pl.BlockSpec(shape, lambda i: (0, 0))

    w1 = jnp.asarray(params["w1"], jnp.float32)
    b1 = jnp.asarray(params["b1"], jnp.float32).reshape(1, H1)
    w2 = jnp.asarray(params["w2"], jnp.float32).astype(act_dtype)
    b2 = jnp.asarray(params["b2"], jnp.float32).reshape(1, H2)
    wl = jnp.asarray(params["w_last"], jnp.float32).reshape(1, H2)
    bl = jnp.asarray(params["b_last"], jnp.float32).reshape(1, 1)

    in_dim = obs_dim + act_dim
    weight_count = in_dim * H1 + H1 + H1 * H2 + H2 + H2 + 1
    cost = pl.CostEstimate(
        flops=2 * B * (in_dim * H1 + H1 * H2 + H2),
        transcendentals=0,
        bytes_accessed=int(jnp.dtype(act_dtype).itemsize * B * in_dim
                           + 4 * (B + weight_count)),
    )
    compiler_params = pltpu.CompilerParams(
        dimension_semantics=("parallel",),   # batch tiles shard across TCs (v7x)
        vmem_limit_bytes=vmem_limit,
    )
    out_shape = jax.ShapeDtypeStruct((B, 1), jnp.float32)
    out_spec = pl.BlockSpec((tb, 1), lambda i: (i, 0))

    if actions is not None:
        w1_obs = w1[:obs_dim, :].astype(act_dtype)
        w1_act = w1[obs_dim:, :].astype(act_dtype)
        out = pl.pallas_call(
            _critic_kernel_obs_act,
            out_shape=out_shape,
            grid=grid,
            in_specs=[
                row_spec(obs_dim),
                row_spec(act_dim),
                resident_spec((obs_dim, H1)),
                resident_spec((act_dim, H1)),
                resident_spec((1, H1)),
                resident_spec((H1, H2)),
                resident_spec((1, H2)),
                resident_spec((1, H2)),
                resident_spec((1, 1)),
            ],
            out_specs=out_spec,
            compiler_params=compiler_params,
            cost_estimate=cost,
        )(obs, actions, w1_obs, w1_act, b1, w2, b2, wl, bl)
    else:
        w1_full = w1.astype(act_dtype)
        out = pl.pallas_call(
            _critic_kernel_obs_only,
            out_shape=out_shape,
            grid=grid,
            in_specs=[
                row_spec(obs_dim),
                resident_spec((obs_dim, H1)),
                resident_spec((1, H1)),
                resident_spec((H1, H2)),
                resident_spec((1, H2)),
                resident_spec((1, H2)),
                resident_spec((1, 1)),
            ],
            out_specs=out_spec,
            compiler_params=compiler_params,
            cost_estimate=cost,
        )(obs, w1_full, b1, w2, b2, wl, bl)

    return out


def init_params(key, in_dim, hidden1, hidden2):
    """Deterministic synthetic parameter init (Kaiming-ish uniform scale)."""
    ks = jax.random.split(key, 6)

    def linear_t(kw, kb, fan_in, fan_out):
        bound = 1.0 / jnp.sqrt(jnp.float32(fan_in))
        w = jax.random.uniform(kw, (fan_in, fan_out), jnp.float32, -bound, bound)
        b = jax.random.uniform(kb, (1, fan_out), jnp.float32, -bound, bound)
        return w, b

    w1, b1 = linear_t(ks[0], ks[1], in_dim, hidden1)
    w2, b2 = linear_t(ks[2], ks[3], hidden1, hidden2)
    wl, bl = linear_t(ks[4], ks[5], hidden2, 1)       # wl: (H2, 1)
    return {"w1": w1, "b1": b1, "w2": w2, "b2": b2,
            "w_last": wl.T, "b_last": bl.reshape(1, 1)}   # w_last as (1, H2) row


def _ref_forward(x, p):
    h = jnp.maximum(x @ p["w1"] + p["b1"], 0.0)
    h = jnp.maximum(h @ p["w2"] + p["b2"], 0.0)
    return h @ p["w_last"].T + p["b_last"]


if __name__ == "__main__":
    key = jax.random.PRNGKey(0)
    k_obs, k_act, k_par, k_obs2, k_act2, k_par2 = jax.random.split(key, 6)

    batch, obs_dim, act_dim = 8, 17, 6
    hidden1 = hidden2 = 64   # backbone.output_dim == 64

    # --- small test: single batch tile -------------------------------------
    obs = jax.random.normal(k_obs, (batch, obs_dim), jnp.float32)
    actions = jax.random.normal(k_act, (batch, act_dim), jnp.float32)
    params = init_params(k_par, obs_dim + act_dim, hidden1, hidden2)

    values = jax.block_until_ready(critic_forward(obs, actions, params))
    ref = _ref_forward(jnp.concatenate([obs, actions], axis=1), params)
    assert values.shape == (batch, 1)
    assert jnp.allclose(values, ref, atol=1e-4, rtol=1e-4)

    # --- larger test: 2-step grid + partial final block (no jnp.pad copy) ---
    big_b = 2500
    obs2 = jax.random.normal(k_obs2, (big_b, obs_dim), jnp.float32)
    act2 = jax.random.normal(k_act2, (big_b, act_dim), jnp.float32)
    values2 = jax.block_until_ready(critic_forward(obs2, act2, params))
    ref2 = _ref_forward(jnp.concatenate([obs2, act2], axis=1), params)
    assert values2.shape == (big_b, 1)
    assert jnp.allclose(values2, ref2, atol=1e-4, rtol=1e-4)

    # --- actions=None path ---------------------------------------------------
    params_obs_only = init_params(k_par2, obs_dim, hidden1, hidden2)
    values3 = jax.block_until_ready(critic_forward(obs, None, params_obs_only))
    ref3 = _ref_forward(obs, params_obs_only)
    assert values3.shape == (batch, 1)
    assert jnp.allclose(values3, ref3, atol=1e-4, rtol=1e-4)

    # --- optional bf16 streaming path (looser tolerance by design) ----------
    values4 = jax.block_until_ready(critic_forward(obs2, act2, params, use_bf16=True))
    assert values4.shape == (big_b, 1)
    assert jnp.allclose(values4, ref2, atol=5e-2, rtol=5e-2)

    print("KERNEL_OK")
</pallas_src>

<mosaic_0001>
module attributes {stable_mosaic.version = 11 : i64} {
  func.func @_critic_kernel_obs_act(%arg0: i32, %arg1: memref<8x17xf32, #tpu.memory_space<vmem>>, %arg2: memref<8x6xf32, #tpu.memory_space<vmem>>, %arg3: memref<17x64xf32, #tpu.memory_space<vmem>>, %arg4: memref<6x64xf32, #tpu.memory_space<vmem>>, %arg5: memref<1x64xf32, #tpu.memory_space<vmem>>, %arg6: memref<64x64xf32, #tpu.memory_space<vmem>>, %arg7: memref<1x64xf32, #tpu.memory_space<vmem>>, %arg8: memref<1x64xf32, #tpu.memory_space<vmem>>, %arg9: memref<1x1xf32, #tpu.memory_space<vmem>>, %arg10: memref<8x1xf32, #tpu.memory_space<vmem>>) attributes {dimension_semantics = [#tpu.dimension_semantics<parallel>], iteration_bounds = array<i64: 1>, scalar_prefetch = 0 : i64, scratch_operands = 0 : i64, tpu.core_type = #tpu.core_type<tc>, window_params = [{transform_indices = @transform_0, window_bounds = array<i64: 8, 17>}, {transform_indices = @transform_1, window_bounds = array<i64: 8, 6>}, {pipeline_mode = #tpu.pipeline_mode<synchronous>, transform_indices = @transform_2, window_bounds = array<i64: 17, 64>}, {pipeline_mode = #tpu.pipeline_mode<synchronous>, transform_indices = @transform_3, window_bounds = array<i64: 6, 64>}, {pipeline_mode = #tpu.pipeline_mode<synchronous>, transform_indices = @transform_4, window_bounds = array<i64: 1, 64>}, {pipeline_mode = #tpu.pipeline_mode<synchronous>, transform_indices = @transform_5, window_bounds = array<i64: 64, 64>}, {pipeline_mode = #tpu.pipeline_mode<synchronous>, transform_indices = @transform_6, window_bounds = array<i64: 1, 64>}, {pipeline_mode = #tpu.pipeline_mode<synchronous>, transform_indices = @transform_7, window_bounds = array<i64: 1, 64>}, {pipeline_mode = #tpu.pipeline_mode<synchronous>, transform_indices = @transform_8, window_bounds = array<i64: 1, 1>}, {transform_indices = @transform_9, window_bounds = array<i64: 8, 1>}]} {
    %c0 = arith.constant 0 : index
    %c0_0 = arith.constant 0 : index
    %0 = vector.load %arg1[%c0, %c0_0] : memref<8x17xf32, #tpu.memory_space<vmem>>, vector<8x17xf32>
    %c0_1 = arith.constant 0 : index
    %c0_2 = arith.constant 0 : index
    %1 = vector.load %arg3[%c0_1, %c0_2] : memref<17x64xf32, #tpu.memory_space<vmem>>, vector<17x64xf32>
    %cst = arith.constant dense<0.000000e+00> : vector<8x64xf32>
    %2 = tpu.matmul %0, %1, %cst {dimension_numbers = #tpu.dot_dimension_numbers<[1], [0], [0], [1], [0, 0, 1, 1], [], []>} : vector<8x17xf32>, vector<17x64xf32>, vector<8x64xf32> -> vector<8x64xf32>
    %c0_3 = arith.constant 0 : index
    %c0_4 = arith.constant 0 : index
    %3 = vector.load %arg2[%c0_3, %c0_4] : memref<8x6xf32, #tpu.memory_space<vmem>>, vector<8x6xf32>
    %c0_5 = arith.constant 0 : index
    %c0_6 = arith.constant 0 : index
    %4 = vector.load %arg4[%c0_5, %c0_6] : memref<6x64xf32, #tpu.memory_space<vmem>>, vector<6x64xf32>
    %cst_7 = arith.constant dense<0.000000e+00> : vector<8x64xf32>
    %5 = tpu.matmul %3, %4, %cst_7 {dimension_numbers = #tpu.dot_dimension_numbers<[1], [0], [0], [1], [0, 0, 1, 1], [], []>} : vector<8x6xf32>, vector<6x64xf32>, vector<8x64xf32> -> vector<8x64xf32>
    %6 = arith.addf %2, %5 : vector<8x64xf32>
    %c0_8 = arith.constant 0 : index
    %c0_9 = arith.constant 0 : index
    %7 = vector.load %arg5[%c0_8, %c0_9] : memref<1x64xf32, #tpu.memory_space<vmem>>, vector<1x64xf32>
    %8 = vector.broadcast %7 : vector<1x64xf32> to vector<8x64xf32>
    %9 = arith.addf %6, %8 : vector<8x64xf32>
    %cst_10 = arith.constant 0.000000e+00 : f32
    %10 = vector.broadcast %cst_10 : f32 to vector<8x64xf32>
    %11 = arith.maximumf %9, %10 : vector<8x64xf32>
    %c0_11 = arith.constant 0 : index
    %c0_12 = arith.constant 0 : index
    %12 = vector.load %arg6[%c0_11, %c0_12] : memref<64x64xf32, #tpu.memory_space<vmem>>, vector<64x64xf32>
    %cst_13 = arith.constant dense<0.000000e+00> : vector<8x64xf32>
    %13 = tpu.matmul %11, %12, %cst_13 {dimension_numbers = #tpu.dot_dimension_numbers<[1], [0], [0], [1], [0, 0, 1, 1], [], []>} : vector<8x64xf32>, vector<64x64xf32>, vector<8x64xf32> -> vector<8x64xf32>
    %c0_14 = arith.constant 0 : index
    %c0_15 = arith.constant 0 : index
    %14 = vector.load %arg7[%c0_14, %c0_15] : memref<1x64xf32, #tpu.memory_space<vmem>>, vector<1x64xf32>
    %15 = vector.broadcast %14 : vector<1x64xf32> to vector<8x64xf32>
    %16 = arith.addf %13, %15 : vector<8x64xf32>
    %cst_16 = arith.constant 0.000000e+00 : f32
    %17 = vector.broadcast %cst_16 : f32 to vector<8x64xf32>
    %18 = arith.maximumf %16, %17 : vector<8x64xf32>
    %c0_17 = arith.constant 0 : index
    %c0_18 = arith.constant 0 : index
    %19 = vector.load %arg8[%c0_17, %c0_18] : memref<1x64xf32, #tpu.memory_space<vmem>>, vector<1x64xf32>
    %20 = vector.broadcast %19 : vector<1x64xf32> to vector<8x64xf32>
    %21 = arith.mulf %18, %20 : vector<8x64xf32>
    %cst_19 = arith.constant dense<0.000000e+00> : vector<8xf32>
    %22 = vector.multi_reduction <add>, %21, %cst_19 [1] : vector<8x64xf32> to vector<8xf32>
    %23 = vector.shape_cast %22 : vector<8xf32> to vector<8x1xf32>
    %c0_20 = arith.constant 0 : index
    %c0_21 = arith.constant 0 : index
    %24 = vector.load %arg9[%c0_20, %c0_21] : memref<1x1xf32, #tpu.memory_space<vmem>>, vector<1x1xf32>
    %25 = vector.broadcast %24 : vector<1x1xf32> to vector<8x1xf32>
    %26 = arith.addf %23, %25 : vector<8x1xf32>
    %c0_22 = arith.constant 0 : index
    %c0_23 = arith.constant 0 : index
    %27 = vector.load %arg10[%c0_22, %c0_23] : memref<8x1xf32, #tpu.memory_space<vmem>>, vector<8x1xf32>
    tpu.vector_store %arg10[%c0_22, %c0_23], %26 {strides = array<i32>} : memref<8x1xf32, #tpu.memory_space<vmem>>, vector<8x1xf32>,
    return
  }
  func.func @transform_0(%arg0: i32) -> (i32, i32) {
    %c0_i32 = arith.constant 0 : i32
    %c0_i32_0 = arith.constant 0 : i32
    return %arg0, %c0_i32 : i32, i32
  }
  func.func @transform_1(%arg0: i32) -> (i32, i32) {
    %c0_i32 = arith.constant 0 : i32
    %c0_i32_0 = arith.constant 0 : i32
    return %arg0, %c0_i32 : i32, i32
  }
  func.func @transform_2(%arg0: i32) -> (i32, i32) {
    %c0_i32 = arith.constant 0 : i32
    %c0_i32_0 = arith.constant 0 : i32
    %c0_i32_1 = arith.constant 0 : i32
    return %c0_i32, %c0_i32_0 : i32, i32
  }
  func.func @transform_3(%arg0: i32) -> (i32, i32) {
    %c0_i32 = arith.constant 0 : i32
    %c0_i32_0 = arith.constant 0 : i32
    %c0_i32_1 = arith.constant 0 : i32
    return %c0_i32, %c0_i32_0 : i32, i32
  }
  func.func @transform_4(%arg0: i32) -> (i32, i32) {
    %c0_i32 = arith.constant 0 : i32
    %c0_i32_0 = arith.constant 0 : i32
    %c0_i32_1 = arith.constant 0 : i32
    return %c0_i32, %c0_i32_0 : i32, i32
  }
  func.func @transform_5(%arg0: i32) -> (i32, i32) {
    %c0_i32 = arith.constant 0 : i32
    %c0_i32_0 = arith.constant 0 : i32
    %c0_i32_1 = arith.constant 0 : i32
    return %c0_i32, %c0_i32_0 : i32, i32
  }
  func.func @transform_6(%arg0: i32) -> (i32, i32) {
    %c0_i32 = arith.constant 0 : i32
    %c0_i32_0 = arith.constant 0 : i32
    %c0_i32_1 = arith.constant 0 : i32
    return %c0_i32, %c0_i32_0 : i32, i32
  }
  func.func @transform_7(%arg0: i32) -> (i32, i32) {
    %c0_i32 = arith.constant 0 : i32
    %c0_i32_0 = arith.constant 0 : i32
    %c0_i32_1 = arith.constant 0 : i32
    return %c0_i32, %c0_i32_0 : i32, i32
  }
  func.func @transform_8(%arg0: i32) -> (i32, i32) {
    %c0_i32 = arith.constant 0 : i32
    %c0_i32_0 = arith.constant 0 : i32
    %c0_i32_1 = arith.constant 0 : i32
    return %c0_i32, %c0_i32_0 : i32, i32
  }
  func.func @transform_9(%arg0: i32) -> (i32, i32) {
    %c0_i32 = arith.constant 0 : i32
    %c0_i32_0 = arith.constant 0 : i32
    return %arg0, %c0_i32 : i32, i32
  }
}

</mosaic_0001>

<bundles_post_ra>
// kernel: tpu_custom_call.1
= control target key start
LH: loop header
LB: loop body
LE: loop exit
PB: predicated region body
PF: predicated region fallthrough
CT: control target
= control target key end

     0   :  { %s677_s0 = inlined_call_operand.hbm [shape: f32[8,17], index: 0, kind: input, shape index: {}]   ;;  %s678_s1 = inlined_call_operand.hbm [shape: f32[8,6], index: 1, kind: input, shape index: {}]   ;;  %s679_s2 = inlined_call_operand.hbm [shape: f32[17,64], index: 2, kind: input, shape index: {}]   ;;  %s680_s3 = inlined_call_operand.vmem [shape: f32[6,64], index: 3, kind: input, shape index: {}]   ;;  %s681_s4 = inlined_call_operand.vmem [shape: f32[1,64], index: 4, kind: input, shape index: {}]   ;;  %s682_s5 = inlined_call_operand.hbm [shape: f32[64,64], index: 5, kind: input, shape index: {}]   ;;  %s683_s6 = inlined_call_operand.vmem [shape: f32[1,64], index: 6, kind: input, shape index: {}]   ;;  %s684_s7 = inlined_call_operand.vmem [shape: f32[1,64], index: 7, kind: input, shape index: {}]   ;;  %s685_s8 = inlined_call_operand.<no memory space> [shape: f32[1,1], index: 8, kind: input, shape index: {}]   ;;  %s686_s9 = inlined_call_operand.vmem [shape: f32[8,1], index: 9, kind: output, shape index: {}]  }
   0x1   :  { %v14_v0 = vstv %s685_s8 }
   0x2   :  { %15 = vst [vmem:[#allocation2] sm:$0x1] %v14_v0 }
   0x3   :  { %16 = vsyncpa [#allocation4], 0 }
   0x4   :  { %17 = vsyncpa [#allocation6], 0 }
   0x5   :  { %18 = vsyncpa [#allocation9], 0  ;;  %s549_s11 = smov [#allocation5]   ;;  %s550_s13 = smov [#allocation3]  }
   0x6   :  { %s35_s12 = sshll.u32 %s549_s11, 4  ;;  %s25_s14 = sshll.u32 %s550_s13, 4  ;;  %s36_s12 = int_to_ptr.vmem [resolvable:$true] %s35_s12  ;;  %s26_s14 = int_to_ptr.vmem [resolvable:$true] %s25_s14 }
   0x7   :  { %s455_s17 = scalar_lea.hbm %s678_s1, 128 }
   0x8   :  { %p456_p0 = scmp.ne.s32.totalorder %s678_s1, %s455_s17  ;;  %p459_p1 = scmp.lt.u32.totalorder %s455_s17, %s678_s1 }
   0xa   :  { %p461_p2 = pnand %p459_p1, %p456_p0 }
   0xc   :  { %464 = shalt.err (!%p461_p2)
}
   0xd   :  { %s465_s21 = scalar_lea.vmem %s36_s12, 128  ;;  %p470_p4 = scmp.lt.s32.totalorder %s36_s12, %s36_s12 }
   0xe   :  { %p466_p3 = scmp.ne.s32.totalorder %s36_s12, %s465_s21  ;;  %p471_p5 = scmp.lt.s32.totalorder %s465_s21, %s465_s21 }
  0x10   :  { %p472_p6 = por %p471_p5, %p470_p4 }
  0x12   :  { %p473_p7 = pnand %p472_p6, %p466_p3 }
  0x14   :  { %476 = shalt.err (!%p473_p7)
}
  0x15   :  { %38 = dma.hbm_to_vmem [thread:$0]  %s678_s1, 128, %s36_s12, [#allocation6]  }
  0x16   :  { %s477_s26 = scalar_lea.hbm %s677_s0, 128 }
  0x17   :  { %p478_p8 = scmp.ne.s32.totalorder %s677_s0, %s477_s26  ;;  %p481_p9 = scmp.lt.u32.totalorder %s477_s26, %s677_s0 }
  0x19   :  { %p483_p10 = pnand %p481_p9, %p478_p8 }
  0x1b   :  { %486 = shalt.err (!%p483_p10)
}
  0x1c   :  { %s487_s10 = scalar_lea.vmem %s26_s14, 128  ;;  %p492_p12 = scmp.lt.s32.totalorder %s26_s14, %s26_s14 }
  0x1d   :  { %p488_p11 = scmp.ne.s32.totalorder %s26_s14, %s487_s10  ;;  %p493_p13 = scmp.lt.s32.totalorder %s487_s10, %s487_s10 }
  0x1f   :  { %p494_p0 = por %p493_p13, %p492_p12 }
  0x21   :  { %p495_p1 = pnand %p494_p0, %p488_p11 }
  0x23   :  { %498 = shalt.err (!%p495_p1)
}
  0x24   :  { %28 = dma.hbm_to_vmem [thread:$0]  %s677_s0, 128, %s26_s14, [#allocation4]  }
  0x25   :  { %s551_s12 = smov [#allocation7]   ;;  %s499_s17 = scalar_lea.hbm %s679_s2, 384 }
  0x26   :  { %s44_s13 = sshll.u32 %s551_s12, 4  ;;  %p500_p2 = scmp.ne.s32.totalorder %s679_s2, %s499_s17  ;;  %s45_s13 = int_to_ptr.vmem [resolvable:$true] %s44_s13 }
  0x27   :  { %p503_p3 = scmp.lt.u32.totalorder %s499_s17, %s679_s2 }
  0x29   :  { %p505_p4 = pnand %p503_p3, %p500_p2 }
  0x2b   :  { %508 = shalt.err (!%p505_p4)
}
  0x2c   :  { %s509_s21 = scalar_lea.vmem %s45_s13, 384  ;;  %p514_p6 = scmp.lt.s32.totalorder %s45_s13, %s45_s13 }
  0x2d   :  { %p510_p5 = scmp.ne.s32.totalorder %s45_s13, %s509_s21  ;;  %p515_p7 = scmp.lt.s32.totalorder %s509_s21, %s509_s21 }
  0x2f   :  { %p516_p8 = por %p515_p7, %p514_p6 }
  0x31   :  { %p517_p9 = pnand %p516_p8, %p510_p5 }
  0x33   :  { %520 = shalt.err (!%p517_p9)
}
  0x34   :  { %s552_s0 = smov 128   ;;  %s553_s14 = smov 8  }
  0x35   :  { %50 = dma.hbm_to_vmem [thread:$0]  %s679_s2, 384, %s45_s13, [#allocation6], %s552_s0, %s552_s0, %s553_s14  }
  0x36   :  { %s554_s24 = smov [#allocation8]   ;;  %s521_s28 = scalar_lea.hbm %s682_s5, 1024 }
  0x37   :  { %s60_s25 = sshll.u32 %s554_s24, 4  ;;  %p522_p10 = scmp.ne.s32.totalorder %s682_s5, %s521_s28  ;;  %s61_s25 = int_to_ptr.vmem [resolvable:$true] %s60_s25 }
  0x38   :  { %p525_p11 = scmp.lt.u32.totalorder %s521_s28, %s682_s5 }
  0x3a   :  { %p527_p12 = pnand %p525_p11, %p522_p10 }
  0x3c   :  { %530 = shalt.err (!%p527_p12)
}
  0x3d   :  { %s531_s11 = scalar_lea.vmem %s61_s25, 1024  ;;  %p536_p0 = scmp.lt.s32.totalorder %s61_s25, %s61_s25 }
  0x3e   :  { %p532_p13 = scmp.ne.s32.totalorder %s61_s25, %s531_s11  ;;  %p537_p1 = scmp.lt.s32.totalorder %s531_s11, %s531_s11 }
  0x40   :  { %p538_p2 = por %p537_p1, %p536_p0 }
  0x42   :  { %p539_p3 = pnand %p538_p2, %p532_p13 }
  0x44   :  { %542 = shalt.err (!%p539_p3)
}
  0x45   :  { %66 = dma.hbm_to_vmem [thread:$0]  %s682_s5, 1024, %s61_s25, [#allocation9], %s552_s0, %s552_s0, %s553_s14  }
  0x46   :  { %543 = dma.done.wait [#allocation4], 128  }
  0x47   :  { %544 = vsyncadd [#allocation4], 4294967168 }
  0x48   :  { %545 = dma.done.wait [#allocation6], 512  }
  0x49   :  { %546 = vsyncadd [#allocation6], 4294966784 }
  0x4a   :  { %547 = dma.done.wait [#allocation9], 1024  }
  0x4b   :  { %548 = vsyncadd [#allocation9], 4294966272  ;;  %v555_v1 = vmov 0.0   ;;  %vm556_vm0 = vmmov 0   ;;  %v557_v2 = vmov 0.0|0.0   ;;  %vm95_vm1 = vcmask 1045504  }
  0x4c   :  { %398 = vmatprep.subr.mxu1 %v555_v1  ;;  %400 = vmatprep.mubr.msk.f32.mxu1 %vm556_vm0, %v555_v1  ;;  %vm91_vm2 = vcmask 48128   ;;  %v90_v3 = vld [vmem:[%s680_s3] sm:$0x3f]  ;;  %v89_v4 = vld [vmem:[#allocation5] sm:$0xff]  ;;  %v86_v5 = vld [vmem:[#allocation7] sm:$0xff]  ;;  %vm173_vm3 = vcmask 1040384  }
  0x4d   :  { %434 = vmatprep.subr.bf16.mxu0 %v557_v2  ;;  %428 = vmatprep.mubr.msk.f32.mxu0 %vm556_vm0, %v555_v1  ;;  %v87_v6 = vld [vmem:[#allocation7 + $0x8] sm:$0xff]  ;;  %v256_v8 = vld [vmem:[#allocation8] sm:$0xff]  ;;  %v257_v9 = vld [vmem:[#allocation8 + $0x8] sm:$0xff]  ;;  %vm169_vm4 = vcmask 138240   ;;  %vm271_vm5 = vcmask 523264   ;;  %vm365_vm6 = vcmask 7168  }
  0x4e   :  { %399 = vmatpush3.msk.msra.mxu1 %vm95_vm1, %v90_v3  ;;  %v432_v7 = vpack.c.bf16 %v87_v6, %v86_v5  ;;  %v435_v10 = vpack.c.bf16 %v257_v9, %v256_v8  ;;  %v88_v11 = vld [vmem:[#allocation7 + $0x10] sm:$0x1]  ;;  %v258_v13 = vld [vmem:[#allocation8 + $0x10] sm:$0xff]  ;;  %v260_v16 = vld [vmem:[#allocation8 + $0x20] sm:$0xff] }
  0x4f   :  { %401 = vmatmul.mubr.msk.f32.vlgmr.msra.gmra.mrb[0].mxu1 %vm91_vm2, %v89_v4  ;;  %431 = vmatprep.subr.bf16.mxu1 %v557_v2  ;;  %v85_v12 = vld [vmem:[#allocation3] sm:$0xff]  ;;  %v261_v17 = vld [vmem:[#allocation8 + $0x28] sm:$0xff]  ;;  %v262_v19 = vld [vmem:[#allocation8 + $0x30] sm:$0xff] }
  0x50   :  { %409 = vmatprep.mubr.msk.f32.mxu1 %vm556_vm0, %v555_v1  ;;  %433 = vmatpush3.bf16.msra.mxu1 %v432_v7  ;;  %v259_v14 = vld [vmem:[#allocation8 + $0x18] sm:$0xff]  ;;  %v441_v18 = vpack.c.bf16 %v261_v17, %v260_v16  ;;  %v378_v25 = vld [vmem:[%s681_s4] ss:$0 sm:$0xff] }
  0x51   :  { %407 = vmatprep.subr.mxu1 %v555_v1  ;;  %436 = vmatpush3.bf16.msra.mxu0 %v435_v10  ;;  %v438_v15 = vpack.c.bf16 %v259_v14, %v258_v13  ;;  %v263_v20 = vld [vmem:[#allocation8 + $0x38] sm:$0xff]  ;;  %v379_v30 = vld [vmem:[%s683_s6] ss:$0 sm:$0xff] }
  0x52   :  { %437 = vmatprep.subr.bf16.mxu0 %v557_v2  ;;  %v444_v21 = vpack.c.bf16 %v263_v20, %v262_v19  ;;  %v381_v34 = vld [vmem:[%s684_s7] ss:$0 sm:$0xff] }
  0x53   :  { %v382_v38 = vld [vmem:[#allocation2] ss:$0 sm:$0xff] }
  0x54   :  { %408 = vmatpush3.msk.msra.mxu1 %vm173_vm3, %v88_v11 }
  0x55   :  { %410 = vmatmul.mubr.msk.f32.vlgmr.msra.gmra.mrb[2].mxu1 %vm169_vm4, %v85_v12  ;;  %439 = vmatpush3.bf16.msra.mxu0 %v438_v15 }
  0x56   :  { %440 = vmatprep.subr.bf16.mxu0 %v557_v2 }
  0x59   :  { %442 = vmatpush3.bf16.msra.mxu0 %v441_v18 }
  0x5a   :  { %443 = vmatprep.subr.bf16.mxu0 %v557_v2 }
  0x5d   :  { %445 = vmatpush3.bf16.msra.mxu0 %v444_v21 }
 0x122   :  { %v165_v22 = vpop.f32.mrb[0].mxu1 }
 0x123   :  { %v402_v23 = vpop.f32.mrb[1].mxu1 }
 0x128   :  { %v243_v24 = vpop.f32.mrb[2].mxu1 }
 0x129   :  { %v244_v26 = vadd.f32 %v243_v24, %v165_v22  ;;  %v411_v27 = vpop.f32.mrb[3].mxu1 }
 0x12b   :  { %v254_v28 = vadd.f32 %v378_v25, %v244_v26 }
 0x12d   :  { %v255_v29 = vmax.f32 %v254_v28, 0.0 }
 0x12f   :  { %429 = vmatmul.mubr.msk.f32.vlgmr.msra.gmra.mrb[0].mxu0 %vm271_vm5, %v255_v29 }
 0x202   :  { %v341_v31 = vpop.f32.mrb[0].mxu0 }
 0x203   :  { %v342_v32 = vadd.f32 %v379_v30, %v341_v31  ;;  %v430_v33 = vpop.f32.mrb[1].mxu0 }
 0x205   :  { %v345_v35 = vmax.f32 %v342_v32, 0.0 }
 0x207   :  { %v353_v36 = vmul.f32 %v381_v34, %v345_v35 }
 0x209   :  { %v354_v37 = vsel %vm271_vm5, %v353_v36, 0.0 }
 0x20a   :  { %355 = vadd.xlane.f32.xlu0 %v354_v37 }
 0x297   :  { %v356_v39 = vpop.xlane.xlu0 %355 }
 0x298   :  { %v364_v40 = vadd.f32 %v382_v38, %v356_v39 }
 0x29a   :  { %366 = vst.msk [vmem:[%s686_s9] sm:$0xff] %vm365_vm6, %v364_v40 }
 0x29b   :  { %371 = vsyncpa [#allocation4], 1 }
 0x29c   :  { %372 = vsyncpa [#allocation6], 1 }
 0x29d   :  { %373 = vsyncpa [#allocation9], 1 }

</bundles_post_ra>
